<compile_context>
chip_gen: v7x
topology: tpu7x:2x2x1
jax: 0.10.0
libtpu: 0.0.40
codegen_flags: <defaults>
</compile_context>

<pallas_src>
import functools

import jax
import jax.numpy as jnp
from jax.experimental import pallas as pl
from jax.experimental.pallas import tpu as pltpu


def _round_up(x: int, m: int) -> int:
    return (x + m - 1) // m * m


def _mlp_fused_kernel(x_ref, w_ref, b_ref, o_ref, *,
                      num_layers: int, din_p: int, dout_p: int, dp: int):
    """One row-tile of activations runs through all layers without leaving
    VMEM.  Weights/biases (whole stacks) are VMEM-resident."""
    h = x_ref[...]                                  # (tm, din_p) bf16
    for l in range(num_layers):                     # static -> unrolled at trace time
        in_w = din_p if l == 0 else dp
        out_w = dout_p if l == num_layers - 1 else dp
        w = w_ref[l, :in_w, :out_w]                 # (in_w, out_w) bf16, static slice
        b = b_ref[l, :, :out_w]                     # (1, out_w) f32
        h = jnp.dot(h.astype(w.dtype), w, preferred_element_type=jnp.float32)
        h = h + b
        if l != num_layers - 1:
            h = jnp.maximum(h, 0.0)
    o_ref[...] = h.astype(o_ref.dtype)              # (tm, dout_p), lane-dense


def mlp_forward_pallas(x, w_stack, b_stack, dim_in, dim_out, *, tm_max: int = 512):
    """Fused MLP forward.

    x:       (M, dim_in) float32
    w_stack: (L, Dp, Dp) bf16  zero-padded, stacked [in, out] weights
    b_stack: (L, 1, Dp)  f32   zero-padded, stacked biases
    Returns (M, dim_out) float32.
    """
    M = x.shape[0]
    L, Dp, Dp2 = w_stack.shape
    assert Dp == Dp2 and Dp % 128 == 0
    assert dim_in <= Dp and dim_out <= Dp

    Din_p = min(Dp, _round_up(max(dim_in, 1), 128))    # narrow, lane-dense input pad
    Dout_p = min(Dp, _round_up(max(dim_out, 1), 128))  # narrow, lane-dense output pad

    # Row tile: multiple of 16 (bf16 sublane packing), large for MXU/HBM
    # efficiency, single block when M is small.  Pad batch instead of masking.
    tm = min(tm_max, _round_up(M, 16))
    Mp = _round_up(M, tm)
    xp = jnp.zeros((Mp, Din_p), jnp.bfloat16).at[:M, :dim_in].set(
        x.astype(jnp.bfloat16))
    grid = (Mp // tm,)

    # VMEM budget: resident weights/biases + double-buffered in/out tiles
    # + intermediate activations + margin.
    w_bytes = int(w_stack.size) * w_stack.dtype.itemsize
    b_bytes = int(b_stack.size) * b_stack.dtype.itemsize
    io_bytes = 2 * tm * Din_p * 2 + 2 * tm * Dout_p * 4
    act_bytes = 2 * tm * Dp * 4
    vmem_needed = w_bytes + b_bytes + io_bytes + act_bytes + (4 << 20)
    # Stay within v7x's 64 MiB physical VMEM (and above v5e's 16 MiB default).
    assert vmem_needed < (48 << 20), (
        "resident weights too large for VMEM; tile N (and K with an f32 "
        "accumulator + 'arbitrary' reduction axis) instead")
    # TODO(synk): add an N/K-tiled path for dim_hidden large enough to blow the VMEM budget.
    vmem_limit = min(max(vmem_needed, 16 << 20), 48 << 20)

    flops = 0
    for l in range(L):
        in_w = Din_p if l == 0 else Dp
        out_w = Dout_p if l == L - 1 else Dp
        flops += 2 * Mp * in_w * out_w
    cost = pl.CostEstimate(
        flops=int(flops),
        transcendentals=0,
        bytes_accessed=int(Mp * Din_p * 2 + w_bytes + b_bytes + Mp * Dout_p * 4),
    )

    out = pl.pallas_call(
        functools.partial(_mlp_fused_kernel, num_layers=L,
                          din_p=Din_p, dout_p=Dout_p, dp=Dp),
        out_shape=jax.ShapeDtypeStruct((Mp, Dout_p), jnp.float32),
        grid=grid,
        in_specs=[
            pl.BlockSpec((tm, Din_p), lambda i: (i, 0)),      # row tile of activations
            pl.BlockSpec((L, Dp, Dp), lambda i: (0, 0, 0)),   # all weights, resident
            pl.BlockSpec((L, 1, Dp), lambda i: (0, 0, 0)),    # all biases, resident
        ],
        out_specs=pl.BlockSpec((tm, Dout_p), lambda i: (i, 0)),  # lane-dense
        compiler_params=pltpu.CompilerParams(
            dimension_semantics=("parallel",),                # megacore-splittable rows
            vmem_limit_bytes=vmem_limit,
        ),
        cost_estimate=cost,
    )(xp, w_stack, b_stack)

    return out[:M, :dim_out]


class MLP:
    """JAX/Pallas port of nerf.network_particle.MLP (forward pass only).

    Parameters are initialized in f32 mimicking nn.Linear's default
    U(-1/sqrt(fan_in), 1/sqrt(fan_in)), zero-padded to (Dp, Dp) with
    Dp = round_up(max(dims), 128), stacked, and stored in bf16 (halves weight
    HBM/VMEM traffic; the MXU accumulates in f32).  Weights are stored as
    [in, out] (transpose of PyTorch's [out, in]) so each layer is y = x@W + b.
    """

    def __init__(self, dim_in, dim_out, dim_hidden, num_layers, bias=True,
                 key=jax.random.PRNGKey(0), param_dtype=jnp.bfloat16):
        self.dim_in = dim_in
        self.dim_out = dim_out
        self.dim_hidden = dim_hidden
        self.num_layers = num_layers
        self.bias = bias
        self.Dp = _round_up(max(dim_in, dim_hidden, dim_out), 128)

        ws, bs = [], []
        for l in range(num_layers):
            fan_in = dim_in if l == 0 else dim_hidden
            fan_out = dim_out if l == num_layers - 1 else dim_hidden
            key, wk, bk = jax.random.split(key, 3)
            bound = 1.0 / (fan_in ** 0.5)
            w = jax.random.uniform(wk, (fan_in, fan_out), jnp.float32,
                                   minval=-bound, maxval=bound)
            if bias:
                b = jax.random.uniform(bk, (fan_out,), jnp.float32,
                                       minval=-bound, maxval=bound)
            else:
                b = jnp.zeros((fan_out,), jnp.float32)
            wp = jnp.zeros((self.Dp, self.Dp), jnp.float32).at[:fan_in, :fan_out].set(w)
            bp = jnp.zeros((1, self.Dp), jnp.float32).at[0, :fan_out].set(b)
            ws.append(wp)
            bs.append(bp)

        self.w_stack = jnp.stack(ws).astype(param_dtype)   # (L, Dp, Dp)
        self.b_stack = jnp.stack(bs)                        # (L, 1, Dp) f32

    def __call__(self, x):
        return mlp_forward_pallas(x, self.w_stack, self.b_stack,
                                  self.dim_in, self.dim_out)

    def reference(self, x):
        # Plain-JAX reference using the same stored (padded, bf16) params and
        # the same compute pattern (bf16 matmul, f32 accumulate/bias/ReLU).
        M = x.shape[0]
        h = jnp.zeros((M, self.Dp), jnp.float32).at[:, :self.dim_in].set(x)
        for l in range(self.num_layers):
            h = jnp.dot(h.astype(self.w_stack.dtype), self.w_stack[l],
                        preferred_element_type=jnp.float32)
            h = h + self.b_stack[l]
            if l != self.num_layers - 1:
                h = jnp.maximum(h, 0.0)
        return h[:, :self.dim_out]


if __name__ == "__main__":
    key = jax.random.PRNGKey(0)
    k_in, k_param, k_in2, k_param2 = jax.random.split(key, 4)

    # Test 1: small NeRF-particle-style MLP, single row tile.
    batch, dim_in, dim_hidden, dim_out, num_layers = 16, 4, 32, 4, 3
    x = jax.random.normal(k_in, (batch, dim_in), jnp.float32)
    mlp = MLP(dim_in, dim_out, dim_hidden, num_layers, bias=True, key=k_param)
    out = jax.block_until_ready(mlp(x))
    ref = mlp.reference(x)
    assert out.shape == (batch, dim_out)
    assert jnp.allclose(out, ref, atol=1e-3, rtol=1e-3), "mismatch vs reference (test 1)"

    # Test 2: ragged batch -> padded multi-block grid (grid=(2,), tm=512).
    batch2, di2, dh2, do2, L2 = 1000, 6, 64, 3, 4
    x2 = jax.random.normal(k_in2, (batch2, di2), jnp.float32)
    mlp2 = MLP(di2, do2, dh2, L2, bias=True, key=k_param2)
    out2 = jax.block_until_ready(mlp2(x2))
    ref2 = mlp2.reference(x2)
    assert out2.shape == (batch2, do2)
    assert jnp.allclose(out2, ref2, atol=1e-3, rtol=1e-3), "mismatch vs reference (test 2)"

    print("KERNEL_OK")
</pallas_src>

<mosaic_0001>
module attributes {stable_mosaic.version = 11 : i64} {
  func.func @_mlp_fused_kernel(%arg0: i32, %arg1: memref<16x128xbf16, #tpu.memory_space<vmem>>, %arg2: memref<3x128x128xbf16, #tpu.memory_space<vmem>>, %arg3: memref<3x1x128xf32, #tpu.memory_space<vmem>>, %arg4: memref<16x128xf32, #tpu.memory_space<vmem>>) attributes {dimension_semantics = [#tpu.dimension_semantics<parallel>], iteration_bounds = array<i64: 1>, scalar_prefetch = 0 : i64, scratch_operands = 0 : i64, tpu.core_type = #tpu.core_type<tc>, window_params = [{transform_indices = @transform_0, window_bounds = array<i64: 16, 128>}, {pipeline_mode = #tpu.pipeline_mode<synchronous>, transform_indices = @transform_1, window_bounds = array<i64: 3, 128, 128>}, {pipeline_mode = #tpu.pipeline_mode<synchronous>, transform_indices = @transform_2, window_bounds = array<i64: 3, 1, 128>}, {transform_indices = @transform_3, window_bounds = array<i64: 16, 128>}]} {
    %c0 = arith.constant 0 : index
    %c0_0 = arith.constant 0 : index
    %0 = vector.load %arg1[%c0, %c0_0] : memref<16x128xbf16, #tpu.memory_space<vmem>>, vector<16x128xbf16>
    %c0_1 = arith.constant 0 : index
    %c0_2 = arith.constant 0 : index
    %c0_3 = arith.constant 0 : index
    %1 = vector.load %arg2[%c0_1, %c0_2, %c0_3] : memref<3x128x128xbf16, #tpu.memory_space<vmem>>, vector<1x128x128xbf16>
    %2 = vector.shape_cast %1 : vector<1x128x128xbf16> to vector<128x128xbf16>
    %c0_4 = arith.constant 0 : index
    %c0_5 = arith.constant 0 : index
    %c0_6 = arith.constant 0 : index
    %3 = vector.load %arg3[%c0_4, %c0_5, %c0_6] : memref<3x1x128xf32, #tpu.memory_space<vmem>>, vector<1x1x128xf32>
    %4 = vector.shape_cast %3 : vector<1x1x128xf32> to vector<1x128xf32>
    %cst = arith.constant dense<0.000000e+00> : vector<16x128xf32>
    %5 = tpu.matmul %0, %2, %cst {dimension_numbers = #tpu.dot_dimension_numbers<[1], [0], [0], [1], [0, 0, 1, 1], [], []>} : vector<16x128xbf16>, vector<128x128xbf16>, vector<16x128xf32> -> vector<16x128xf32>
    %6 = vector.broadcast %4 : vector<1x128xf32> to vector<16x128xf32>
    %7 = arith.addf %5, %6 : vector<16x128xf32>
    %cst_7 = arith.constant 0.000000e+00 : f32
    %8 = vector.broadcast %cst_7 : f32 to vector<16x128xf32>
    %9 = arith.maximumf %7, %8 : vector<16x128xf32>
    %c1 = arith.constant 1 : index
    %c0_8 = arith.constant 0 : index
    %c0_9 = arith.constant 0 : index
    %10 = vector.load %arg2[%c1, %c0_8, %c0_9] : memref<3x128x128xbf16, #tpu.memory_space<vmem>>, vector<1x128x128xbf16>
    %11 = vector.shape_cast %10 : vector<1x128x128xbf16> to vector<128x128xbf16>
    %c1_10 = arith.constant 1 : index
    %c0_11 = arith.constant 0 : index
    %c0_12 = arith.constant 0 : index
    %12 = vector.load %arg3[%c1_10, %c0_11, %c0_12] : memref<3x1x128xf32, #tpu.memory_space<vmem>>, vector<1x1x128xf32>
    %13 = vector.shape_cast %12 : vector<1x1x128xf32> to vector<1x128xf32>
    %14 = arith.truncf %9 : vector<16x128xf32> to vector<16x128xbf16>
    %cst_13 = arith.constant dense<0.000000e+00> : vector<16x128xf32>
    %15 = tpu.matmul %14, %11, %cst_13 {dimension_numbers = #tpu.dot_dimension_numbers<[1], [0], [0], [1], [0, 0, 1, 1], [], []>} : vector<16x128xbf16>, vector<128x128xbf16>, vector<16x128xf32> -> vector<16x128xf32>
    %16 = vector.broadcast %13 : vector<1x128xf32> to vector<16x128xf32>
    %17 = arith.addf %15, %16 : vector<16x128xf32>
    %cst_14 = arith.constant 0.000000e+00 : f32
    %18 = vector.broadcast %cst_14 : f32 to vector<16x128xf32>
    %19 = arith.maximumf %17, %18 : vector<16x128xf32>
    %c2 = arith.constant 2 : index
    %c0_15 = arith.constant 0 : index
    %c0_16 = arith.constant 0 : index
    %20 = vector.load %arg2[%c2, %c0_15, %c0_16] : memref<3x128x128xbf16, #tpu.memory_space<vmem>>, vector<1x128x128xbf16>
    %21 = vector.shape_cast %20 : vector<1x128x128xbf16> to vector<128x128xbf16>
    %c2_17 = arith.constant 2 : index
    %c0_18 = arith.constant 0 : index
    %c0_19 = arith.constant 0 : index
    %22 = vector.load %arg3[%c2_17, %c0_18, %c0_19] : memref<3x1x128xf32, #tpu.memory_space<vmem>>, vector<1x1x128xf32>
    %23 = vector.shape_cast %22 : vector<1x1x128xf32> to vector<1x128xf32>
    %24 = arith.truncf %19 : vector<16x128xf32> to vector<16x128xbf16>
    %cst_20 = arith.constant dense<0.000000e+00> : vector<16x128xf32>
    %25 = tpu.matmul %24, %21, %cst_20 {dimension_numbers = #tpu.dot_dimension_numbers<[1], [0], [0], [1], [0, 0, 1, 1], [], []>} : vector<16x128xbf16>, vector<128x128xbf16>, vector<16x128xf32> -> vector<16x128xf32>
    %26 = vector.broadcast %23 : vector<1x128xf32> to vector<16x128xf32>
    %27 = arith.addf %25, %26 : vector<16x128xf32>
    %c0_21 = arith.constant 0 : index
    %c0_22 = arith.constant 0 : index
    %28 = vector.load %arg4[%c0_21, %c0_22] : memref<16x128xf32, #tpu.memory_space<vmem>>, vector<16x128xf32>
    tpu.vector_store %arg4[%c0_21, %c0_22], %27 {strides = array<i32>} : memref<16x128xf32, #tpu.memory_space<vmem>>, vector<16x128xf32>,
    return
  }
  func.func @transform_0(%arg0: i32) -> (i32, i32) {
    %c0_i32 = arith.constant 0 : i32
    %c0_i32_0 = arith.constant 0 : i32
    return %arg0, %c0_i32 : i32, i32
  }
  func.func @transform_1(%arg0: i32) -> (i32, i32, i32) {
    %c0_i32 = arith.constant 0 : i32
    %c0_i32_0 = arith.constant 0 : i32
    %c0_i32_1 = arith.constant 0 : i32
    %c0_i32_2 = arith.constant 0 : i32
    return %c0_i32, %c0_i32_0, %c0_i32_1 : i32, i32, i32
  }
  func.func @transform_2(%arg0: i32) -> (i32, i32, i32) {
    %c0_i32 = arith.constant 0 : i32
    %c0_i32_0 = arith.constant 0 : i32
    %c0_i32_1 = arith.constant 0 : i32
    %c0_i32_2 = arith.constant 0 : i32
    return %c0_i32, %c0_i32_0, %c0_i32_1 : i32, i32, i32
  }
  func.func @transform_3(%arg0: i32) -> (i32, i32) {
    %c0_i32 = arith.constant 0 : i32
    %c0_i32_0 = arith.constant 0 : i32
    return %arg0, %c0_i32 : i32, i32
  }
}

</mosaic_0001>

<bundles_post_ra>
// kernel: tpu_custom_call.1
= control target key start
LH: loop header
LB: loop body
LE: loop exit
PB: predicated region body
PF: predicated region fallthrough
CT: control target
= control target key end

     0   :  { %8 = vsyncpa [#allocation3], 0  ;;  %s745_s0 = inlined_call_operand.hbm [shape: bf16[16,128], index: 0, kind: input, shape index: {}]   ;;  %s746_s1 = inlined_call_operand.hbm [shape: bf16[3,128,128], index: 1, kind: input, shape index: {}]   ;;  %s747_s2 = inlined_call_operand.vmem [shape: f32[3,1,128], index: 2, kind: input, shape index: {}]   ;;  %s748_s3 = inlined_call_operand.hbm [shape: f32[16,128], index: 3, kind: output, shape index: {}]  }
   0x1   :  { %9 = vsyncpa [#allocation6], 0 }
   0x2   :  { %10 = vsyncpa [#allocation4], 0  ;;  %s641_s12 = smov [#allocation2]   ;;  %s569_s16 = scalar_lea.hbm %s745_s0, 128 }
   0x3   :  { %s16_s13 = sshll.u32 %s641_s12, 4  ;;  %p570_p0 = scmp.ne.s32.totalorder %s745_s0, %s569_s16  ;;  %s17_s13 = int_to_ptr.vmem [resolvable:$true] %s16_s13 }
   0x4   :  { %p573_p1 = scmp.lt.u32.totalorder %s569_s16, %s745_s0 }
   0x6   :  { %p575_p2 = pnand %p573_p1, %p570_p0 }
   0x8   :  { %578 = shalt.err (!%p575_p2)
}
   0x9   :  { %s579_s21 = scalar_lea.vmem %s17_s13, 128  ;;  %p584_p4 = scmp.lt.s32.totalorder %s17_s13, %s17_s13 }
   0xa   :  { %p580_p3 = scmp.ne.s32.totalorder %s17_s13, %s579_s21  ;;  %p585_p5 = scmp.lt.s32.totalorder %s579_s21, %s579_s21 }
   0xc   :  { %p586_p6 = por %p585_p5, %p584_p4 }
   0xe   :  { %p587_p7 = pnand %p586_p6, %p580_p3 }
  0x10   :  { %590 = shalt.err (!%p587_p7)
}
  0x11   :  { %s642_s22 = smov 64   ;;  %s643_s23 = smov 4  }
  0x12   :  { %22 = dma.hbm_to_vmem [thread:$0]  %s745_s0, 128, %s17_s13, [#allocation3], %s642_s22, %s642_s22, %s643_s23  }
  0x13   :  { %s644_s26 = smov [#allocation5]   ;;  %s591_s30 = scalar_lea.hbm %s746_s1, 3072 }
  0x14   :  { %s28_s27 = sshll.u32 %s644_s26, 4  ;;  %p592_p8 = scmp.ne.s32.totalorder %s746_s1, %s591_s30  ;;  %s29_s27 = int_to_ptr.vmem [resolvable:$true] %s28_s27 }
  0x15   :  { %p595_p9 = scmp.lt.u32.totalorder %s591_s30, %s746_s1 }
  0x17   :  { %p597_p10 = pnand %p595_p9, %p592_p8 }
  0x19   :  { %600 = shalt.err (!%p597_p10)
}
  0x1a   :  { %s601_s8 = scalar_lea.vmem %s29_s27, 3072  ;;  %p606_p12 = scmp.lt.s32.totalorder %s29_s27, %s29_s27 }
  0x1b   :  { %p602_p11 = scmp.ne.s32.totalorder %s29_s27, %s601_s8  ;;  %p607_p13 = scmp.lt.s32.totalorder %s601_s8, %s601_s8 }
  0x1d   :  { %p608_p0 = por %p607_p13, %p606_p12 }
  0x1f   :  { %p609_p1 = pnand %p608_p0, %p602_p11 }
  0x21   :  { %612 = shalt.err (!%p609_p1)
}
  0x22   :  { %34 = dma.hbm_to_vmem [thread:$0]  %s746_s1, 3072, %s29_s27, [#allocation6], %s642_s22, %s642_s22, %s643_s23  }
  0x23   :  { %635 = dma.done.wait [#allocation3], 128  }
  0x24   :  { %636 = vsyncadd [#allocation3], 4294967168 }
  0x25   :  { %637 = dma.done.wait [#allocation6], 3072  }
  0x26   :  { %638 = vsyncadd [#allocation6], 4294964224  ;;  %v645_v0 = vmov 0.0   ;;  %vm646_vm0 = vmmov 0   ;;  %v544_v1 = vld [vmem:[#allocation5] sm:$0xff]   ;;  %v545_v2 = vld [vmem:[#allocation5 + $0x8] sm:$0xff]  }
  0x27   :  { %475 = vmatprep.subr.bf16.mxu0 %v645_v0  ;;  %491 = vmatprep.mubr.msk.bf16.mxu0 %vm646_vm0, %v645_v0  ;;  %v546_v3 = vld [vmem:[#allocation5 + $0x10] sm:$0xff]   ;;  %v553_v4 = vld [vmem:[#allocation5 + $0x40] sm:$0xff]   ;;  %v547_v5 = vld [vmem:[#allocation5 + $0x18] sm:$0xff]   ;;  %s647_s15 = smov [#allocation7]  }
  0x28   :  { %495 = vmatprep.subr.bf16.mxu1 %v645_v0  ;;  %511 = vmatprep.mubr.msk.bf16.mxu1 %vm646_vm0, %v645_v0  ;;  %v554_v6 = vld [vmem:[#allocation5 + $0x48] sm:$0xff]   ;;  %v548_v7 = vld [vmem:[#allocation5 + $0x20] sm:$0xff]   ;;  %v555_v8 = vld [vmem:[#allocation5 + $0x50] sm:$0xff]   ;;  %s405_s16 = sshll.u32 %s647_s15, 4  ;;  %s406_s16 = int_to_ptr.vmem [resolvable:$true] %s405_s16 }
  0x29   :  { %476 = vmatpush3.bf16.msra.mxu0 %v544_v1  ;;  %496 = vmatpush3.bf16.msra.mxu1 %v553_v4  ;;  %v549_v9 = vld [vmem:[#allocation5 + $0x28] sm:$0xff]   ;;  %v556_v10 = vld [vmem:[#allocation5 + $0x58] sm:$0xff]   ;;  %v550_v11 = vld [vmem:[#allocation5 + $0x30] sm:$0xff]   ;;  %s613_s17 = scalar_lea.vmem %s406_s16, 256  ;;  %p618_p3 = scmp.lt.s32.totalorder %s406_s16, %s406_s16 }
  0x2a   :  { %477 = vmatprep.subr.bf16.mxu0 %v645_v0  ;;  %497 = vmatprep.subr.bf16.mxu1 %v645_v0  ;;  %v557_v12 = vld [vmem:[#allocation5 + $0x60] sm:$0xff]   ;;  %v551_v13 = vld [vmem:[#allocation5 + $0x38] sm:$0xff]   ;;  %v558_v14 = vld [vmem:[#allocation5 + $0x68] sm:$0xff]   ;;  %p614_p2 = scmp.ne.s32.totalorder %s406_s16, %s613_s17  ;;  %p619_p4 = scmp.lt.s32.totalorder %s613_s17, %s613_s17 }
  0x2b   :  { %v552_v15 = vld [vmem:[#allocation2] sm:$0xff]   ;;  %v559_v16 = vld [vmem:[#allocation5 + $0x70] sm:$0xff]   ;;  %v561_v18 = vld [vmem:[#allocation5 + $0x80] sm:$0xff]  }
  0x2c   :  { %v560_v17 = vld [vmem:[#allocation5 + $0x78] sm:$0xff]   ;;  %v562_v19 = vld [vmem:[#allocation5 + $0x88] sm:$0xff]   ;;  %v563_v20 = vld [vmem:[#allocation5 + $0x90] sm:$0xff]   ;;  %p620_p5 = por %p619_p4, %p618_p3 }
  0x2d   :  { %478 = vmatpush3.bf16.msra.mxu0 %v545_v2  ;;  %498 = vmatpush3.bf16.msra.mxu1 %v554_v6  ;;  %v564_v21 = vld [vmem:[#allocation5 + $0x98] sm:$0xff]   ;;  %v565_v22 = vld [vmem:[#allocation5 + $0xa0] sm:$0xff]   ;;  %v566_v23 = vld [vmem:[#allocation5 + $0xa8] sm:$0xff]  }
  0x2e   :  { %479 = vmatprep.subr.bf16.mxu0 %v645_v0  ;;  %499 = vmatprep.subr.bf16.mxu1 %v645_v0  ;;  %v418_v24 = vld [vmem:[%s747_s2] ss:$0 sm:$0xff]  ;;  %v567_v34 = vld [vmem:[#allocation5 + $0xb0] sm:$0xff]   ;;  %v429_v36 = vld [vmem:[%s747_s2 + $0x1] ss:$0 sm:$0xff]  ;;  %p621_p6 = pnand %p620_p5, %p614_p2 }
  0x2f   :  { %v568_v35 = vld [vmem:[#allocation5 + $0xb8] sm:$0xff]  }
  0x30   :  { %v439_v46 = vld [vmem:[%s747_s2 + $0x2] ss:$0 sm:$0xff] }
  0x31   :  { %480 = vmatpush3.bf16.msra.mxu0 %v546_v3  ;;  %500 = vmatpush3.bf16.msra.mxu1 %v555_v8 }
  0x32   :  { %481 = vmatprep.subr.bf16.mxu0 %v645_v0  ;;  %501 = vmatprep.subr.bf16.mxu1 %v645_v0 }
  0x35   :  { %482 = vmatpush3.bf16.msra.mxu0 %v547_v5  ;;  %502 = vmatpush3.bf16.msra.mxu1 %v556_v10 }
  0x36   :  { %483 = vmatprep.subr.bf16.mxu0 %v645_v0  ;;  %503 = vmatprep.subr.bf16.mxu1 %v645_v0 }
  0x39   :  { %484 = vmatpush3.bf16.msra.mxu0 %v548_v7  ;;  %504 = vmatpush3.bf16.msra.mxu1 %v557_v12 }
  0x3a   :  { %485 = vmatprep.subr.bf16.mxu0 %v645_v0  ;;  %505 = vmatprep.subr.bf16.mxu1 %v645_v0 }
  0x3d   :  { %486 = vmatpush3.bf16.msra.mxu0 %v549_v9  ;;  %506 = vmatpush3.bf16.msra.mxu1 %v558_v14 }
  0x3e   :  { %487 = vmatprep.subr.bf16.mxu0 %v645_v0  ;;  %507 = vmatprep.subr.bf16.mxu1 %v645_v0 }
  0x41   :  { %488 = vmatpush3.bf16.msra.mxu0 %v550_v11  ;;  %508 = vmatpush3.bf16.msra.mxu1 %v559_v16 }
  0x42   :  { %489 = vmatprep.subr.bf16.mxu0 %v645_v0  ;;  %509 = vmatprep.subr.bf16.mxu1 %v645_v0 }
  0x45   :  { %490 = vmatpush3.bf16.msra.mxu0 %v551_v13  ;;  %510 = vmatpush3.bf16.msra.mxu1 %v560_v17 }
  0x46   :  { %515 = vmatprep.subr.bf16.mxu0 %v645_v0 }
  0x48   :  { %492 = vmatmul.mubr.bf16.vlgmr.msra.gmra.mrb[0].mxu0 %v552_v15 }
  0x49   :  { %531 = vmatprep.mubr.msk.bf16.mxu0 %vm646_vm0, %v645_v0  ;;  %516 = vmatpush3.bf16.msra.mxu0 %v561_v18 }
  0x4a   :  { %517 = vmatprep.subr.bf16.mxu0 %v645_v0 }
  0x4d   :  { %518 = vmatpush3.bf16.msra.mxu0 %v562_v19 }
  0x4e   :  { %519 = vmatprep.subr.bf16.mxu0 %v645_v0 }
  0x51   :  { %520 = vmatpush3.bf16.msra.mxu0 %v563_v20 }
  0x52   :  { %521 = vmatprep.subr.bf16.mxu0 %v645_v0 }
  0x55   :  { %522 = vmatpush3.bf16.msra.mxu0 %v564_v21 }
  0x56   :  { %523 = vmatprep.subr.bf16.mxu0 %v645_v0 }
  0x59   :  { %524 = vmatpush3.bf16.msra.mxu0 %v565_v22 }
  0x5a   :  { %525 = vmatprep.subr.bf16.mxu0 %v645_v0 }
  0x5d   :  { %526 = vmatpush3.bf16.msra.mxu0 %v566_v23 }
  0x5e   :  { %527 = vmatprep.subr.bf16.mxu0 %v645_v0 }
  0x61   :  { %528 = vmatpush3.bf16.msra.mxu0 %v567_v34 }
  0x62   :  { %529 = vmatprep.subr.bf16.mxu0 %v645_v0 }
  0x65   :  { %530 = vmatpush3.bf16.msra.mxu0 %v568_v35 }
 0x11b   :  { %v157_v25 = vpop.f32.mrb[0].mxu0 }
 0x11c   :  { %v158_v26 = vadd.f32 %v418_v24, %v157_v25  ;;  %v493_v27 = vpop.f32.mrb[1].mxu0 }
 0x11d   :  { %v160_v28 = vpop.f32.mrb[2].mxu0 }
 0x11e   :  { %v161_v29 = vadd.f32 %v418_v24, %v160_v28  ;;  %v494_v30 = vpop.f32.mrb[3].mxu0  ;;  %v164_v31 = vmax.f32 %v158_v26, 0.0 }
 0x120   :  { %v165_v32 = vmax.f32 %v161_v29, 0.0 }
 0x122   :  { %v185_v33 = vpack.c.bf16 %v165_v32, %v164_v31 }
 0x124   :  { %512 = vmatmul.mubr.bf16.vlgmr.msra.gmra.mrb[0].mxu1 %v185_v33 }
 0x1f7   :  { %v274_v37 = vpop.f32.mrb[0].mxu1 }
 0x1f8   :  { %v275_v38 = vadd.f32 %v429_v36, %v274_v37  ;;  %v513_v39 = vpop.f32.mrb[1].mxu1 }
 0x1f9   :  { %v277_v40 = vpop.f32.mrb[2].mxu1 }
 0x1fa   :  { %v278_v41 = vadd.f32 %v429_v36, %v277_v40  ;;  %v514_v42 = vpop.f32.mrb[3].mxu1  ;;  %v281_v43 = vmax.f32 %v275_v38, 0.0 }
 0x1fc   :  { %v282_v44 = vmax.f32 %v278_v41, 0.0 }
 0x1fe   :  { %v302_v45 = vpack.c.bf16 %v282_v44, %v281_v43 }
 0x200   :  { %532 = vmatmul.mubr.bf16.vlgmr.msra.gmra.mrb[4].mxu0 %v302_v45 }
 0x2d3   :  { %v391_v47 = vpop.f32.mrb[4].mxu0 }
 0x2d4   :  { %v392_v48 = vadd.f32 %v439_v46, %v391_v47  ;;  %v533_v49 = vpop.f32.mrb[5].mxu0 }
 0x2d5   :  { %v394_v50 = vpop.f32.mrb[6].mxu0 }
 0x2d6   :  { %398 = vst [vmem:[#allocation7] sm:$0xff] %v392_v48  ;;  %v395_v51 = vadd.f32 %v439_v46, %v394_v50  ;;  %v534_v52 = vpop.f32.mrb[7].mxu0 }
 0x2d8   :  { %399 = vst [vmem:[#allocation7 + $0x8] sm:$0xff] %v395_v51 }
 0x2d9   :  { %624 = shalt.err (!%p621_p6)
}
 0x2da   :  { %s625_s19 = scalar_lea.hbm %s748_s3, 256 }
 0x2db   :  { %p626_p7 = scmp.ne.s32.totalorder %s748_s3, %s625_s19  ;;  %p629_p8 = scmp.lt.u32.totalorder %s625_s19, %s748_s3 }
 0x2dd   :  { %p631_p9 = pnand %p629_p8, %p626_p7 }
 0x2df   :  { %634 = shalt.err (!%p631_p9)
}
 0x2e0   :  { %s648_s24 = smov 128   ;;  %s649_s25 = smov 8  }
 0x2e1   :  { %411 = dma.vmem_to_hbm [thread:$0]  %s406_s16, 256, %s748_s3, [#allocation4], %s648_s24, %s648_s24, %s649_s25  }
 0x2e2   :  { %639 = dma.done.wait [#allocation4], 256  }
 0x2e3   :  { %640 = vsyncadd [#allocation4], 4294967040 }
 0x2e4   :  { %415 = vsyncpa [#allocation3], 1 }
 0x2e5   :  { %416 = vsyncpa [#allocation6], 1 }
 0x2e6   :  { %417 = vsyncpa [#allocation4], 1 }

</bundles_post_ra>
